<compile_context>
chip_gen: v6e
topology: v6e:2x2x1
jax: 0.10.0
libtpu: 0.0.40
codegen_flags: <defaults>
</compile_context>

<pallas_src>
import jax
import jax.numpy as jnp
from jax import lax
from jax.experimental import pallas as pl
from jax.experimental.pallas import tpu as pltpu


# ----------------------------- in-kernel math ------------------------------

def _erf(x):
    # Abramowitz & Stegun 7.1.26 rational approximation (max abs err ~1.5e-7),
    # built from ops that lower cleanly on the TPU VPU/EUP.
    a1, a2, a3, a4, a5 = 0.254829592, -0.284496736, 1.421413741, -1.453152027, 1.061405429
    p = 0.3275911
    sign = jnp.where(x >= 0.0, 1.0, -1.0)
    ax = jnp.abs(x)
    t = 1.0 / (1.0 + p * ax)
    poly = ((((a5 * t + a4) * t + a3) * t + a2) * t + a1) * t
    return sign * (1.0 - poly * jnp.exp(-ax * ax))


def _gelu_exact(x):
    # nn.GELU() default == exact (erf) GELU.
    return 0.5 * x * (1.0 + _erf(x * 0.7071067811865476))


# --------------------------------- kernel ----------------------------------

def _conv1d_residual_kernel(x_ref, wr_ref, br_ref, wc_ref, bc_ref, o_ref):
    # x_ref : (BN, L, Cin)    unpadded input block (NLC)
    # wr_ref: (3*Cin, Cin)    residual conv im2col weights (row = k*Cin + i)
    # br_ref: (1, Cin)
    # wc_ref: (3*Cin, Cout)   main conv im2col weights
    # bc_ref: (1, Cout)
    # o_ref : (BN, L, Cout)
    BN, L, Cin = x_ref.shape
    Cout = o_ref.shape[2]

    x = x_ref[...]                                            # (BN, L, Cin)

    def im2col(v3):
        # v3: (BN, L, C) -> (BN*L, 3*C): taps [l-1, l, l+1] along channels.
        # Out-of-range taps are zero (== Conv1d padding=1); shifts are built
        # per-sequence so batch fusion never mixes neighboring sequences.
        C = v3.shape[2]
        z = jnp.zeros((BN, 1, C), jnp.float32)
        prev = jnp.concatenate([z, v3[:, :L - 1, :]], axis=1)   # x[l-1]
        nxt = jnp.concatenate([v3[:, 1:, :], z], axis=1)        # x[l+1]
        return jnp.concatenate(
            [prev.reshape(BN * L, C),
             v3.reshape(BN * L, C),
             nxt.reshape(BN * L, C)],
            axis=-1)                                            # (BN*L, 3C)

    # --- residual conv (Cin->Cin) + skip + GELU: one MXU matmul -------------
    h = jnp.dot(im2col(x), wr_ref[...], preferred_element_type=jnp.float32)
    h = _gelu_exact(h + br_ref[...] + x.reshape(BN * L, Cin))   # (BN*L, Cin)

    # --- main conv (Cin->Cout) + GELU: one MXU matmul, no scratch round-trip
    y = jnp.dot(im2col(h.reshape(BN, L, Cin)), wc_ref[...],
                preferred_element_type=jnp.float32)
    y = _gelu_exact(y + bc_ref[...])                            # (BN*L, Cout)

    o_ref[...] = y.reshape(BN, L, Cout).astype(o_ref.dtype)


# -------------------------------- wrapper ----------------------------------

def _pick_bn(n, l, cin, cout, budget_bytes=2 << 20):
    """Largest divisor of n whose fused working set stays under budget_bytes
    (keeps per-step VMEM bounded; important for v7x's 64 MiB VMEM)."""
    per_seq = 4 * l * (2 * cin          # input block (double-buffered)
                       + 2 * cout       # output block (double-buffered)
                       + 2 * 3 * cin    # two im2col slabs
                       + cin + cout)    # h, y intermediates
    cap = max(1, budget_bytes // max(per_seq, 1))
    bn = 1
    for d in range(1, n + 1):
        if n % d == 0 and d <= cap:
            bn = d
    return bn


def conv1d_residual(x_ncl, w_res, b_res, w_cnn, b_cnn):
    """x_ncl: (N, Cin, L) float32 (PyTorch NCL layout).
    w_res: (Cin, Cin, 3), b_res: (Cin,), w_cnn: (Cout, Cin, 3), b_cnn: (Cout,)
    Returns (N, Cout, L) float32."""
    N, Cin, L = x_ncl.shape
    Cout = w_cnn.shape[0]

    # NCL -> NLC so channels sit on the 128-lane axis inside the kernel.
    x_nlc = jnp.transpose(x_ncl, (0, 2, 1)).astype(jnp.float32)   # (N, L, Cin)

    # PyTorch Conv1d weight (O, I, K) -> im2col matrix (3*I, O):
    # row k*I + i holds w[o, i, k] so taps k=0,1,2 match [l-1, l, l+1].
    wr = jnp.transpose(w_res.astype(jnp.float32), (2, 1, 0)).reshape(3 * Cin, Cin)
    wc = jnp.transpose(w_cnn.astype(jnp.float32), (2, 1, 0)).reshape(3 * Cin, Cout)
    br = b_res.astype(jnp.float32).reshape(1, Cin)
    bc = b_cnn.astype(jnp.float32).reshape(1, Cout)

    BN = _pick_bn(N, L, Cin, Cout)

    out_nlc = pl.pallas_call(
        _conv1d_residual_kernel,
        out_shape=jax.ShapeDtypeStruct((N, L, Cout), jnp.float32),
        grid_spec=pltpu.PrefetchScalarGridSpec(
            num_scalar_prefetch=0,
            grid=(N // BN,),
            in_specs=[
                pl.BlockSpec((BN, L, Cin), lambda b: (b, 0, 0)),
                pl.BlockSpec((3 * Cin, Cin), lambda b: (0, 0)),    # grid-invariant
                pl.BlockSpec((1, Cin), lambda b: (0, 0)),          # grid-invariant
                pl.BlockSpec((3 * Cin, Cout), lambda b: (0, 0)),   # grid-invariant
                pl.BlockSpec((1, Cout), lambda b: (0, 0)),         # grid-invariant
            ],
            out_specs=pl.BlockSpec((BN, L, Cout), lambda b: (b, 0, 0)),
        ),
        compiler_params=pltpu.CompilerParams(
            dimension_semantics=("parallel",),
            vmem_limit_bytes=32 * 1024 * 1024,
        ),
    )(x_nlc, wr, br, wc, bc)

    # NLC -> NCL
    return jnp.transpose(out_nlc, (0, 2, 1))


# ------------------------------ reference (JAX) -----------------------------

def _reference(x_ncl, w_res, b_res, w_cnn, b_cnn):
    def conv1d(x, w, b):
        y = lax.conv_general_dilated(
            x, w, window_strides=(1,), padding=((1, 1),),
            dimension_numbers=("NCH", "OIH", "NCH"))
        return y + b[None, :, None]

    h = jax.nn.gelu(conv1d(x_ncl, w_res, b_res) + x_ncl, approximate=False)
    return jax.nn.gelu(conv1d(h, w_cnn, b_cnn), approximate=False)


# ---------------------------------- main ------------------------------------

if __name__ == "__main__":
    N, Cin, Cout, L = 2, 4, 8, 16

    key = jax.random.PRNGKey(0)
    kx, k1, k2, k3, k4 = jax.random.split(key, 5)

    x = jax.random.normal(kx, (N, Cin, L), dtype=jnp.float32)
    # Deterministic synthetic parameters (shapes match nn.Conv1d init).
    w_res = 0.2 * jax.random.normal(k1, (Cin, Cin, 3), dtype=jnp.float32)
    b_res = 0.1 * jax.random.normal(k2, (Cin,), dtype=jnp.float32)
    w_cnn = 0.2 * jax.random.normal(k3, (Cout, Cin, 3), dtype=jnp.float32)
    b_cnn = 0.1 * jax.random.normal(k4, (Cout,), dtype=jnp.float32)

    out = conv1d_residual(x, w_res, b_res, w_cnn, b_cnn)
    out = jax.block_until_ready(out)

    ref = _reference(x, w_res, b_res, w_cnn, b_cnn)
    assert out.shape == (N, Cout, L)
    assert jnp.allclose(out, ref, atol=1e-4, rtol=1e-4)

    print("KERNEL_OK")
</pallas_src>

<mosaic_0001>
module attributes {stable_mosaic.version = 11 : i64} {
  func.func @_conv1d_residual_kernel(%arg0: i32, %arg1: memref<2x16x4xf32, #tpu.memory_space<vmem>>, %arg2: memref<12x4xf32, #tpu.memory_space<vmem>>, %arg3: memref<1x4xf32, #tpu.memory_space<vmem>>, %arg4: memref<12x8xf32, #tpu.memory_space<vmem>>, %arg5: memref<1x8xf32, #tpu.memory_space<vmem>>, %arg6: memref<2x16x8xf32, #tpu.memory_space<vmem>>) attributes {dimension_semantics = [#tpu.dimension_semantics<parallel>], iteration_bounds = array<i64: 1>, scalar_prefetch = 0 : i64, scratch_operands = 0 : i64, tpu.core_type = #tpu.core_type<tc>, window_params = [{transform_indices = @transform_0, window_bounds = array<i64: 2, 16, 4>}, {pipeline_mode = #tpu.pipeline_mode<synchronous>, transform_indices = @transform_1, window_bounds = array<i64: 12, 4>}, {pipeline_mode = #tpu.pipeline_mode<synchronous>, transform_indices = @transform_2, window_bounds = array<i64: 1, 4>}, {pipeline_mode = #tpu.pipeline_mode<synchronous>, transform_indices = @transform_3, window_bounds = array<i64: 12, 8>}, {pipeline_mode = #tpu.pipeline_mode<synchronous>, transform_indices = @transform_4, window_bounds = array<i64: 1, 8>}, {transform_indices = @transform_5, window_bounds = array<i64: 2, 16, 8>}]} {
    %c0 = arith.constant 0 : index
    %c0_0 = arith.constant 0 : index
    %c0_1 = arith.constant 0 : index
    %0 = vector.load %arg1[%c0, %c0_0, %c0_1] : memref<2x16x4xf32, #tpu.memory_space<vmem>>, vector<2x16x4xf32>
    %cst = arith.constant 0.000000e+00 : f32
    %1 = vector.broadcast %cst : f32 to vector<2x1x4xf32>
    %2 = vector.extract_strided_slice %0 {offsets = [0, 0, 0], sizes = [2, 15, 4], strides = [1, 1, 1]} : vector<2x16x4xf32> to vector<2x15x4xf32>
    %3 = tpu.concatenate %1, %2 in 1 : vector<2x1x4xf32>, vector<2x15x4xf32> -> vector<2x16x4xf32>
    %4 = vector.extract_strided_slice %0 {offsets = [0, 1, 0], sizes = [2, 15, 4], strides = [1, 1, 1]} : vector<2x16x4xf32> to vector<2x15x4xf32>
    %5 = tpu.concatenate %4, %1 in 1 : vector<2x15x4xf32>, vector<2x1x4xf32> -> vector<2x16x4xf32>
    %6 = vector.shape_cast %3 : vector<2x16x4xf32> to vector<32x4xf32>
    %7 = vector.shape_cast %0 : vector<2x16x4xf32> to vector<32x4xf32>
    %8 = vector.shape_cast %5 : vector<2x16x4xf32> to vector<32x4xf32>
    %9 = tpu.concatenate %6, %7, %8 in 1 : vector<32x4xf32>, vector<32x4xf32>, vector<32x4xf32> -> vector<32x12xf32>
    %c0_2 = arith.constant 0 : index
    %c0_3 = arith.constant 0 : index
    %10 = vector.load %arg2[%c0_2, %c0_3] : memref<12x4xf32, #tpu.memory_space<vmem>>, vector<12x4xf32>
    %cst_4 = arith.constant dense<0.000000e+00> : vector<32x4xf32>
    %11 = tpu.matmul %9, %10, %cst_4 {dimension_numbers = #tpu.dot_dimension_numbers<[1], [0], [0], [1], [0, 0, 1, 1], [], []>} : vector<32x12xf32>, vector<12x4xf32>, vector<32x4xf32> -> vector<32x4xf32>
    %c0_5 = arith.constant 0 : index
    %c0_6 = arith.constant 0 : index
    %12 = vector.load %arg3[%c0_5, %c0_6] : memref<1x4xf32, #tpu.memory_space<vmem>>, vector<1x4xf32>
    %13 = vector.broadcast %12 : vector<1x4xf32> to vector<32x4xf32>
    %14 = arith.addf %11, %13 : vector<32x4xf32>
    %15 = vector.shape_cast %0 : vector<2x16x4xf32> to vector<32x4xf32>
    %16 = arith.addf %14, %15 : vector<32x4xf32>
    %cst_7 = arith.constant 5.000000e-01 : f32
    %17 = vector.broadcast %cst_7 : f32 to vector<32x4xf32>
    %18 = arith.mulf %17, %16 : vector<32x4xf32>
    %cst_8 = arith.constant 0.707106769 : f32
    %19 = vector.broadcast %cst_8 : f32 to vector<32x4xf32>
    %20 = arith.mulf %16, %19 : vector<32x4xf32>
    %cst_9 = arith.constant 0.000000e+00 : f32
    %21 = vector.broadcast %cst_9 : f32 to vector<32x4xf32>
    %22 = arith.cmpf oge, %20, %21 : vector<32x4xf32>
    %cst_10 = arith.constant 1.000000e+00 : f32
    %cst_11 = arith.constant -1.000000e+00 : f32
    %23 = vector.broadcast %cst_10 : f32 to vector<32x4xf32>
    %24 = vector.broadcast %cst_11 : f32 to vector<32x4xf32>
    %25 = arith.select %22, %23, %24 : vector<32x4xi1>, vector<32x4xf32>
    %26 = math.absf %20 : vector<32x4xf32>
    %cst_12 = arith.constant 0.327591091 : f32
    %27 = vector.broadcast %cst_12 : f32 to vector<32x4xf32>
    %28 = arith.mulf %27, %26 : vector<32x4xf32>
    %cst_13 = arith.constant 1.000000e+00 : f32
    %29 = vector.broadcast %cst_13 : f32 to vector<32x4xf32>
    %30 = arith.addf %29, %28 : vector<32x4xf32>
    %cst_14 = arith.constant 1.000000e+00 : f32
    %31 = vector.broadcast %cst_14 : f32 to vector<32x4xf32>
    %32 = arith.divf %31, %30 : vector<32x4xf32>
    %cst_15 = arith.constant 1.06140542 : f32
    %33 = vector.broadcast %cst_15 : f32 to vector<32x4xf32>
    %34 = arith.mulf %33, %32 : vector<32x4xf32>
    %cst_16 = arith.constant -1.45315206 : f32
    %35 = vector.broadcast %cst_16 : f32 to vector<32x4xf32>
    %36 = arith.addf %34, %35 : vector<32x4xf32>
    %37 = arith.mulf %36, %32 : vector<32x4xf32>
    %cst_17 = arith.constant 1.42141378 : f32
    %38 = vector.broadcast %cst_17 : f32 to vector<32x4xf32>
    %39 = arith.addf %37, %38 : vector<32x4xf32>
    %40 = arith.mulf %39, %32 : vector<32x4xf32>
    %cst_18 = arith.constant -0.284496725 : f32
    %41 = vector.broadcast %cst_18 : f32 to vector<32x4xf32>
    %42 = arith.addf %40, %41 : vector<32x4xf32>
    %43 = arith.mulf %42, %32 : vector<32x4xf32>
    %cst_19 = arith.constant 0.254829586 : f32
    %44 = vector.broadcast %cst_19 : f32 to vector<32x4xf32>
    %45 = arith.addf %43, %44 : vector<32x4xf32>
    %46 = arith.mulf %45, %32 : vector<32x4xf32>
    %cst_20 = arith.constant 0.000000e+00 : f32
    %47 = vector.broadcast %cst_20 : f32 to vector<32x4xf32>
    %48 = arith.subf %47, %26 : vector<32x4xf32>
    %49 = arith.mulf %48, %26 : vector<32x4xf32>
    %50 = math.exp %49 : vector<32x4xf32>
    %51 = arith.mulf %46, %50 : vector<32x4xf32>
    %cst_21 = arith.constant 1.000000e+00 : f32
    %52 = vector.broadcast %cst_21 : f32 to vector<32x4xf32>
    %53 = arith.subf %52, %51 : vector<32x4xf32>
    %54 = arith.mulf %25, %53 : vector<32x4xf32>
    %cst_22 = arith.constant 1.000000e+00 : f32
    %55 = vector.broadcast %cst_22 : f32 to vector<32x4xf32>
    %56 = arith.addf %55, %54 : vector<32x4xf32>
    %57 = arith.mulf %18, %56 : vector<32x4xf32>
    %58 = vector.shape_cast %57 : vector<32x4xf32> to vector<2x16x4xf32>
    %cst_23 = arith.constant 0.000000e+00 : f32
    %59 = vector.broadcast %cst_23 : f32 to vector<2x1x4xf32>
    %60 = vector.extract_strided_slice %58 {offsets = [0, 0, 0], sizes = [2, 15, 4], strides = [1, 1, 1]} : vector<2x16x4xf32> to vector<2x15x4xf32>
    %61 = tpu.concatenate %59, %60 in 1 : vector<2x1x4xf32>, vector<2x15x4xf32> -> vector<2x16x4xf32>
    %62 = vector.extract_strided_slice %58 {offsets = [0, 1, 0], sizes = [2, 15, 4], strides = [1, 1, 1]} : vector<2x16x4xf32> to vector<2x15x4xf32>
    %63 = tpu.concatenate %62, %59 in 1 : vector<2x15x4xf32>, vector<2x1x4xf32> -> vector<2x16x4xf32>
    %64 = vector.shape_cast %61 : vector<2x16x4xf32> to vector<32x4xf32>
    %65 = vector.shape_cast %58 : vector<2x16x4xf32> to vector<32x4xf32>
    %66 = vector.shape_cast %63 : vector<2x16x4xf32> to vector<32x4xf32>
    %67 = tpu.concatenate %64, %65, %66 in 1 : vector<32x4xf32>, vector<32x4xf32>, vector<32x4xf32> -> vector<32x12xf32>
    %c0_24 = arith.constant 0 : index
    %c0_25 = arith.constant 0 : index
    %68 = vector.load %arg4[%c0_24, %c0_25] : memref<12x8xf32, #tpu.memory_space<vmem>>, vector<12x8xf32>
    %cst_26 = arith.constant dense<0.000000e+00> : vector<32x8xf32>
    %69 = tpu.matmul %67, %68, %cst_26 {dimension_numbers = #tpu.dot_dimension_numbers<[1], [0], [0], [1], [0, 0, 1, 1], [], []>} : vector<32x12xf32>, vector<12x8xf32>, vector<32x8xf32> -> vector<32x8xf32>
    %c0_27 = arith.constant 0 : index
    %c0_28 = arith.constant 0 : index
    %70 = vector.load %arg5[%c0_27, %c0_28] : memref<1x8xf32, #tpu.memory_space<vmem>>, vector<1x8xf32>
    %71 = vector.broadcast %70 : vector<1x8xf32> to vector<32x8xf32>
    %72 = arith.addf %69, %71 : vector<32x8xf32>
    %cst_29 = arith.constant 5.000000e-01 : f32
    %73 = vector.broadcast %cst_29 : f32 to vector<32x8xf32>
    %74 = arith.mulf %73, %72 : vector<32x8xf32>
    %cst_30 = arith.constant 0.707106769 : f32
    %75 = vector.broadcast %cst_30 : f32 to vector<32x8xf32>
    %76 = arith.mulf %72, %75 : vector<32x8xf32>
    %cst_31 = arith.constant 0.000000e+00 : f32
    %77 = vector.broadcast %cst_31 : f32 to vector<32x8xf32>
    %78 = arith.cmpf oge, %76, %77 : vector<32x8xf32>
    %cst_32 = arith.constant 1.000000e+00 : f32
    %cst_33 = arith.constant -1.000000e+00 : f32
    %79 = vector.broadcast %cst_32 : f32 to vector<32x8xf32>
    %80 = vector.broadcast %cst_33 : f32 to vector<32x8xf32>
    %81 = arith.select %78, %79, %80 : vector<32x8xi1>, vector<32x8xf32>
    %82 = math.absf %76 : vector<32x8xf32>
    %cst_34 = arith.constant 0.327591091 : f32
    %83 = vector.broadcast %cst_34 : f32 to vector<32x8xf32>
    %84 = arith.mulf %83, %82 : vector<32x8xf32>
    %cst_35 = arith.constant 1.000000e+00 : f32
    %85 = vector.broadcast %cst_35 : f32 to vector<32x8xf32>
    %86 = arith.addf %85, %84 : vector<32x8xf32>
    %cst_36 = arith.constant 1.000000e+00 : f32
    %87 = vector.broadcast %cst_36 : f32 to vector<32x8xf32>
    %88 = arith.divf %87, %86 : vector<32x8xf32>
    %cst_37 = arith.constant 1.06140542 : f32
    %89 = vector.broadcast %cst_37 : f32 to vector<32x8xf32>
    %90 = arith.mulf %89, %88 : vector<32x8xf32>
    %cst_38 = arith.constant -1.45315206 : f32
    %91 = vector.broadcast %cst_38 : f32 to vector<32x8xf32>
    %92 = arith.addf %90, %91 : vector<32x8xf32>
    %93 = arith.mulf %92, %88 : vector<32x8xf32>
    %cst_39 = arith.constant 1.42141378 : f32
    %94 = vector.broadcast %cst_39 : f32 to vector<32x8xf32>
    %95 = arith.addf %93, %94 : vector<32x8xf32>
    %96 = arith.mulf %95, %88 : vector<32x8xf32>
    %cst_40 = arith.constant -0.284496725 : f32
    %97 = vector.broadcast %cst_40 : f32 to vector<32x8xf32>
    %98 = arith.addf %96, %97 : vector<32x8xf32>
    %99 = arith.mulf %98, %88 : vector<32x8xf32>
    %cst_41 = arith.constant 0.254829586 : f32
    %100 = vector.broadcast %cst_41 : f32 to vector<32x8xf32>
    %101 = arith.addf %99, %100 : vector<32x8xf32>
    %102 = arith.mulf %101, %88 : vector<32x8xf32>
    %cst_42 = arith.constant 0.000000e+00 : f32
    %103 = vector.broadcast %cst_42 : f32 to vector<32x8xf32>
    %104 = arith.subf %103, %82 : vector<32x8xf32>
    %105 = arith.mulf %104, %82 : vector<32x8xf32>
    %106 = math.exp %105 : vector<32x8xf32>
    %107 = arith.mulf %102, %106 : vector<32x8xf32>
    %cst_43 = arith.constant 1.000000e+00 : f32
    %108 = vector.broadcast %cst_43 : f32 to vector<32x8xf32>
    %109 = arith.subf %108, %107 : vector<32x8xf32>
    %110 = arith.mulf %81, %109 : vector<32x8xf32>
    %cst_44 = arith.constant 1.000000e+00 : f32
    %111 = vector.broadcast %cst_44 : f32 to vector<32x8xf32>
    %112 = arith.addf %111, %110 : vector<32x8xf32>
    %113 = arith.mulf %74, %112 : vector<32x8xf32>
    %114 = vector.shape_cast %113 : vector<32x8xf32> to vector<2x16x8xf32>
    %c0_45 = arith.constant 0 : index
    %c0_46 = arith.constant 0 : index
    %c0_47 = arith.constant 0 : index
    %115 = vector.load %arg6[%c0_45, %c0_46, %c0_47] : memref<2x16x8xf32, #tpu.memory_space<vmem>>, vector<2x16x8xf32>
    tpu.vector_store %arg6[%c0_45, %c0_46, %c0_47], %114 {strides = array<i32>} : memref<2x16x8xf32, #tpu.memory_space<vmem>>, vector<2x16x8xf32>,
    return
  }
  func.func @transform_0(%arg0: i32) -> (i32, i32, i32) {
    %c0_i32 = arith.constant 0 : i32
    %c0_i32_0 = arith.constant 0 : i32
    %c0_i32_1 = arith.constant 0 : i32
    return %arg0, %c0_i32, %c0_i32_0 : i32, i32, i32
  }
  func.func @transform_1(%arg0: i32) -> (i32, i32) {
    %c0_i32 = arith.constant 0 : i32
    %c0_i32_0 = arith.constant 0 : i32
    %c0_i32_1 = arith.constant 0 : i32
    return %c0_i32, %c0_i32_0 : i32, i32
  }
  func.func @transform_2(%arg0: i32) -> (i32, i32) {
    %c0_i32 = arith.constant 0 : i32
    %c0_i32_0 = arith.constant 0 : i32
    %c0_i32_1 = arith.constant 0 : i32
    return %c0_i32, %c0_i32_0 : i32, i32
  }
  func.func @transform_3(%arg0: i32) -> (i32, i32) {
    %c0_i32 = arith.constant 0 : i32
    %c0_i32_0 = arith.constant 0 : i32
    %c0_i32_1 = arith.constant 0 : i32
    return %c0_i32, %c0_i32_0 : i32, i32
  }
  func.func @transform_4(%arg0: i32) -> (i32, i32) {
    %c0_i32 = arith.constant 0 : i32
    %c0_i32_0 = arith.constant 0 : i32
    %c0_i32_1 = arith.constant 0 : i32
    return %c0_i32, %c0_i32_0 : i32, i32
  }
  func.func @transform_5(%arg0: i32) -> (i32, i32, i32) {
    %c0_i32 = arith.constant 0 : i32
    %c0_i32_0 = arith.constant 0 : i32
    %c0_i32_1 = arith.constant 0 : i32
    return %arg0, %c0_i32, %c0_i32_0 : i32, i32, i32
  }
}

</mosaic_0001>

<bundles_post_ra>
// kernel: tpu_custom_call.1
= control target key start
LH: loop header
LB: loop body
LE: loop exit
PB: predicated region body
PF: predicated region fallthrough
CT: control target
= control target key end

     0   :  { %vm41_vm0 = vcmask 1046528   ;;  %vm110_vm1 = vcmask 1043456   ;;  %s675_s22 = smov 4   ;;  %s676_s6 = smov 8   ;;  %vm28_vm2 = vcmask 1040384   ;;  %vm78_vm3 = vcmask 31744   ;;  %s910_s0 = inlined_call_operand.vmem [shape: f32[2,16,4], index: 0, kind: input, shape index: {}]   ;;  %s911_s1 = inlined_call_operand.vmem [shape: f32[12,4], index: 1, kind: input, shape index: {}]   ;;  %s912_s2 = inlined_call_operand.vmem [shape: f32[1,4], index: 2, kind: input, shape index: {}]   ;;  %s913_s3 = inlined_call_operand.vmem [shape: f32[12,8], index: 3, kind: input, shape index: {}]   ;;  %s914_s4 = inlined_call_operand.vmem [shape: f32[1,8], index: 4, kind: input, shape index: {}]   ;;  %s915_s5 = inlined_call_operand.vmem [shape: f32[2,16,8], index: 5, kind: output, shape index: {}]  }
   0x1   :  { %v711_v0 = vld [vmem:[%s910_s0] sm:$0xff]  ;;  %v716_v1 = vld [vmem:[%s910_s0 + $0x8] sm:$0xff]  ;;  %v732_v7 = vld [vmem:[%s910_s0 + $0x10] sm:$0xff]  ;;  %vm83_vm4 = vcmask 64512   ;;  %vm97_vm5 = vcmask 97280  }
   0x2   :  { %52 = vrot.lane.b32.xlu0 %v711_v0, %s675_s22  ;;  %v42_v2 = vrot.slane %v711_v0, 1  ;;  %v43_v3 = vrot.slane %v716_v1, 1  ;;  %v89_v4 = vld [vmem:[%s911_s1 + $0x8] sm:$0xf]  ;;  %v88_v5 = vld [vmem:[%s911_s1] sm:$0xff]  ;;  %v737_v8 = vld [vmem:[%s910_s0 + $0x18] sm:$0xff] }
   0x3   :  { %620 = vmatprep.subr.msk.mxu0 %vm110_vm1, %v89_v4  ;;  %v45_v10 = vrot.slane %v732_v7, 1  ;;  %v46_v11 = vrot.slane %v737_v8, 1  ;;  %v29_v14 = vrot.slane %v711_v0, 7  ;;  %v30_v16 = vrot.slane %v716_v1, 7  ;;  %v596_v38 = vld [vmem:[%s912_s2] ss:$0 sm:$0xff] }
   0x4   :  { %v44_v6 = vsel %vm41_vm0, %v42_v2, %v43_v3  ;;  %621 = vmatpush3.msk.msra.mxu0 %vm110_vm1, %v89_v4  ;;  %v50_v9 = vsel %vm41_vm0, %v43_v3, 0.0  ;;  %v32_v21 = vrot.slane %v732_v7, 7  ;;  %v33_v27 = vrot.slane %v737_v8, 7 }
   0x5   :  { %66 = vrot.lane.b32.xlu1 %v44_v6, %s676_s6  ;;  %622 = vmatprep.subr.mxu0 %v88_v5  ;;  %v47_v12 = vsel %vm41_vm0, %v45_v10, %v46_v11  ;;  %v51_v13 = vsel %vm41_vm0, %v46_v11, 0.0  ;;  %v39_v15 = vsel %vm28_vm2, 0.0, %v29_v14  ;;  %v31_v19 = vsel %vm28_vm2, %v29_v14, %v30_v16 }
   0x6   :  { %54 = vrot.lane.b32.xlu0 %v716_v1, %s675_s22  ;;  %623 = vmatpush3.msra.mxu0 %v88_v5  ;;  %v40_v26 = vsel %vm28_vm2, 0.0, %v32_v21  ;;  %v34_v32 = vsel %vm28_vm2, %v32_v21, %v33_v27 }
   0x9   :  { %68 = vrot.lane.b32.xlu1 %v50_v9, %s676_s6 }
   0xa   :  { %56 = vrot.lane.b32.xlu0 %v732_v7, %s675_s22 }
   0xd   :  { %58 = vrot.lane.b32.xlu1 %v737_v8, %s675_s22 }
   0xe   :  { %70 = vrot.lane.b32.xlu0 %v47_v12, %s676_s6 }
  0x11   :  { %72 = vrot.lane.b32.xlu1 %v51_v13, %s676_s6 }
  0x74   :  { %v53_v17 = vpop.permute.xlu0 %52 }
  0x75   :  { %v79_v18 = vsel %vm78_vm3, %v39_v15, %v53_v17 }
  0x77   :  { %v67_v20 = vpop.permute.xlu1 %66 }
  0x78   :  { %v55_v22 = vpop.permute.xlu0 %54  ;;  %v84_v23 = vsel %vm83_vm4, %v79_v18, %v67_v20 }
  0x79   :  { %v80_v24 = vsel %vm78_vm3, %v31_v19, %v55_v22  ;;  %624 = vmatprep.mubr.msk.f32.mxu0 %vm97_vm5, %v84_v23 }
  0x7b   :  { %v69_v25 = vpop.permute.xlu1 %68 }
  0x7c   :  { %v85_v28 = vsel %vm83_vm4, %v80_v24, %v69_v25  ;;  %v57_v29 = vpop.permute.xlu0 %56 }
  0x7d   :  { %625 = vmatmul.mubr.msk.f32.vlgmr.msra.gmra.mxu0 %vm97_vm5, %v85_v28  ;;  %v81_v30 = vsel %vm78_vm3, %v40_v26, %v57_v29 }
  0x7f   :  { %v59_v31 = vpop.permute.xlu1 %58 }
  0x80   :  { %v71_v33 = vpop.permute.xlu0 %70  ;;  %v82_v35 = vsel %vm78_vm3, %v34_v32, %v59_v31 }
  0x81   :  { %v86_v34 = vsel %vm83_vm4, %v81_v30, %v71_v33 }
  0x82   :  { %627 = vmatprep.mubr.msk.f32.mxu0 %vm97_vm5, %v86_v34 }
  0x83   :  { %v73_v36 = vpop.permute.xlu1 %72 }
  0x84   :  { %v87_v37 = vsel %vm83_vm4, %v82_v35, %v73_v36 }
  0x85   :  { %628 = vmatmul.mubr.msk.f32.gmra.mxu0 %vm97_vm5, %v87_v37 }
 0x13d   :  { %v626_v39 = vpop.f32.mrf.mxu0 }
 0x13e   :  { %v186_v40 = vadd.f32 %v626_v39, %v596_v38 }
 0x13f   :  { %v180_v41 = vpop.f32.mrf.mxu0 }
 0x140   :  { %v780_v42 = vadd.f32 %v186_v40, %v716_v1  ;;  %v181_v43 = vadd.f32 %v596_v38, %v180_v41 }
 0x142   :  { %v783_v44 = vmul.f32 0.70710677, %v780_v42  ;;  %v786_v45 = vadd.f32 %v181_v43, %v711_v0 }
 0x144   :  { %v220_v46 = vand.u32 2147483647, %v783_v44  ;;  %v790_v47 = vmul.f32 0.70710677, %v786_v45  ;;  %vm212_vm6 = vcmp.ge.f32.partialorder %v783_v44, 0.0  ;;  %v371_v44 = vld [vmem:[%s913_s3] sm:$0xff] }
 0x145   :  { %v629_v48 = vpop.f32.mrf.mxu0 }
 0x146   :  { %v224_v49 = vmul.f32 0.3275911, %v220_v46  ;;  %v219_v50 = vand.u32 2147483647, %v790_v47  ;;  %v196_v51 = vadd.f32 %v629_v48, %v596_v38  ;;  %v276_v63 = vsub.f32 0.0, %v220_v46 }
 0x147   :  { %v190_v52 = vpop.f32.mrf.mxu0  ;;  %vm211_vm7 = vcmp.ge.f32.partialorder %v790_v47, 0.0  ;;  %v204_v47 = vmul.f32 0.5, %v780_v42 }
 0x148   :  { %v228_v53 = vadd.f32 1.0, %v224_v49  ;;  %v223_v54 = vmul.f32 0.3275911, %v219_v50  ;;  %v794_v55 = vadd.f32 %v196_v51, %v737_v8  ;;  %v191_v56 = vadd.f32 %v596_v38, %v190_v52 }
 0x149   :  { %v275_v3 = vsub.f32 0.0, %v219_v50  ;;  %v280_v4 = vmul.f32 %v276_v63, %v220_v46 }
 0x14a   :  { %643 = vrcp.f32 %v228_v53  ;;  %v227_v57 = vadd.f32 1.0, %v223_v54  ;;  %v797_v58 = vmul.f32 0.70710677, %v794_v55  ;;  %v800_v59 = vadd.f32 %v191_v56, %v732_v7 }
 0x14b   :  { %v279_v7 = vmul.f32 %v275_v3, %v219_v50  ;;  %v285_v8 = vmul.f32 1.442695, %v280_v4 }
 0x14c   :  { %645 = vrcp.f32 %v227_v57  ;;  %v222_v60 = vand.u32 2147483647, %v797_v58  ;;  %v804_v61 = vmul.f32 0.70710677, %v800_v59  ;;  %v372_v57 = vld [vmem:[%s913_s3 + $0x8] sm:$0xf] }
 0x14d   :  { %v283_v13 = vmul.f32 1.442695, %v279_v7  ;;  %630 = vmatprep.subr.msk.mxu1 %vm110_vm1, %v372_v57  ;;  %vm214_vm8 = vcmp.ge.f32.partialorder %v797_v58, 0.0 }
 0x14e   :  { %v226_v62 = vmul.f32 0.3275911, %v222_v60  ;;  %v221_v0 = vand.u32 2147483647, %v804_v61  ;;  %v278_v10 = vsub.f32 0.0, %v222_v60  ;;  %631 = vmatpush3.msk.msra.mxu1 %vm110_vm1, %v372_v57  ;;  %vm213_vm9 = vcmp.ge.f32.partialorder %v804_v61, 0.0 }
 0x14f   :  { %632 = vmatprep.subr.mxu1 %v371_v44 }
 0x150   :  { %v230_v1 = vadd.f32 1.0, %v226_v62  ;;  %v225_v2 = vmul.f32 0.3275911, %v221_v0  ;;  %v277_v15 = vsub.f32 0.0, %v221_v0  ;;  %v282_v17 = vmul.f32 %v278_v10, %v222_v60  ;;  %633 = vmatpush3.msra.mxu1 %v371_v44 }
 0x151   :  { %v677_v60 = vmov -1.0  }
 0x152   :  { %647 = vrcp.f32 %v230_v1  ;;  %v229_v5 = vadd.f32 1.0, %v225_v2  ;;  %v281_v22 = vmul.f32 %v277_v15, %v221_v0  ;;  %v289_v24 = vmul.f32 1.442695, %v282_v17 }
 0x153   :  { %v216_v62 = vsel %vm212_vm6, 1.0, %v677_v60  ;;  %v217_v61 = vsel %vm213_vm9, 1.0, %v677_v60 }
 0x154   :  { %649 = vrcp.f32 %v229_v5  ;;  %v287_v31 = vmul.f32 1.442695, %v281_v22 }
 0x155   :  { %651 = vpow2.f32 %v285_v8 }
 0x156   :  { %653 = vpow2.f32 %v283_v13  ;;  %v203_v13 = vmul.f32 0.5, %v786_v45 }
 0x157   :  { %v644_v6 = vpop.eup %643  ;;  %655 = vpow2.f32 %v289_v24 }
 0x158   :  { %v240_v9 = vmul.f32 1.0614054, %v644_v6  ;;  %657 = vpow2.f32 %v287_v31 }
 0x159   :  { %v646_v11 = vpop.eup %645 }
 0x15a   :  { %v244_v12 = vadd.f32 -1.4531521, %v240_v9  ;;  %v239_v14 = vmul.f32 1.0614054, %v646_v11 }
 0x15c   :  { %v248_v16 = vmul.f32 %v644_v6, %v244_v12  ;;  %v243_v18 = vadd.f32 -1.4531521, %v239_v14 }
 0x15e   :  { %v252_v19 = vadd.f32 1.4214138, %v248_v16  ;;  %v247_v20 = vmul.f32 %v646_v11, %v243_v18 }
 0x15f   :  { %v648_v21 = vpop.eup %647 }
 0x160   :  { %v256_v23 = vmul.f32 %v644_v6, %v252_v19  ;;  %v251_v25 = vadd.f32 1.4214138, %v247_v20  ;;  %v242_v26 = vmul.f32 1.0614054, %v648_v21 }
 0x161   :  { %v650_v28 = vpop.eup %649 }
 0x162   :  { %v260_v27 = vadd.f32 -0.28449672, %v256_v23  ;;  %v255_v29 = vmul.f32 %v646_v11, %v251_v25  ;;  %v246_v30 = vadd.f32 -1.4531521, %v242_v26  ;;  %v241_v33 = vmul.f32 1.0614054, %v650_v28  ;;  %v652_v43 = vpop.eup %651 }
 0x163   :  { %v654_v53 = vpop.eup %653  ;;  %v206_v25 = vmul.f32 0.5, %v794_v55 }
 0x164   :  { %v264_v32 = vmul.f32 %v644_v6, %v260_v27  ;;  %v259_v34 = vadd.f32 -0.28449672, %v255_v29  ;;  %v250_v35 = vmul.f32 %v648_v21, %v246_v30  ;;  %v245_v37 = vadd.f32 -1.4531521, %v241_v33  ;;  %v656_v10 = vpop.eup %655 }
 0x165   :  { %v658_v17 = vpop.eup %657 }
 0x166   :  { %v268_v36 = vadd.f32 0.2548296, %v264_v32  ;;  %v263_v38 = vmul.f32 %v646_v11, %v259_v34  ;;  %v254_v39 = vadd.f32 1.4214138, %v250_v35  ;;  %v249_v41 = vmul.f32 %v650_v28, %v245_v37 }
 0x167   :  { %v205_v32 = vmul.f32 0.5, %v800_v59 }
 0x168   :  { %v272_v40 = vmul.f32 %v644_v6, %v268_v36  ;;  %v267_v46 = vadd.f32 0.2548296, %v263_v38  ;;  %v258_v48 = vmul.f32 %v648_v21, %v254_v39  ;;  %v253_v50 = vadd.f32 1.4214138, %v249_v41 }
 0x169   :  { %v215_v6 = vsel %vm211_vm7, 1.0, %v677_v60 }
 0x16a   :  { %v292_v49 = vmul.f32 %v652_v43, %v272_v40  ;;  %v271_v51 = vmul.f32 %v646_v11, %v267_v46  ;;  %v262_v52 = vadd.f32 -0.28449672, %v258_v48  ;;  %v257_v56 = vmul.f32 %v650_v28, %v253_v50 }
 0x16c   :  { %v296_v54 = vsub.f32 1.0, %v292_v49  ;;  %v291_v63 = vmul.f32 %v654_v53, %v271_v51  ;;  %v266_v0 = vmul.f32 %v648_v21, %v262_v52  ;;  %v261_v2 = vadd.f32 -0.28449672, %v257_v56 }
 0x16e   :  { %v300_v1 = vmul.f32 %v296_v54, %v216_v62  ;;  %v295_v3 = vsub.f32 1.0, %v291_v63  ;;  %v270_v4 = vadd.f32 0.2548296, %v266_v0  ;;  %v265_v7 = vmul.f32 %v650_v28, %v261_v2  ;;  %v602_v2 = vld [vmem:[%s914_s4] ss:$0 sm:$0xff] }
 0x170   :  { %v304_v5 = vadd.f32 1.0, %v300_v1  ;;  %v299_v8 = vmul.f32 %v295_v3, %v215_v6  ;;  %v274_v9 = vmul.f32 %v648_v21, %v270_v4  ;;  %v269_v12 = vadd.f32 0.2548296, %v265_v7 }
 0x171   :  { %v218_v21 = vsel %vm214_vm8, 1.0, %v677_v60 }
 0x172   :  { %v308_v11 = vmul.f32 %v304_v5, %v204_v47  ;;  %v303_v14 = vadd.f32 1.0, %v299_v8  ;;  %v294_v15 = vmul.f32 %v656_v10, %v274_v9  ;;  %v273_v42 = vmul.f32 %v650_v28, %v269_v12 }
 0x174   :  { %339 = vrot.lane.b32.xlu1 %v308_v11, %s675_s22  ;;  %v328_v16 = vrot.slane %v308_v11, 1  ;;  %v307_v18 = vmul.f32 %v303_v14, %v203_v13  ;;  %v298_v19 = vsub.f32 1.0, %v294_v15  ;;  %v293_v22 = vmul.f32 %v658_v17, %v273_v42 }
 0x175   :  { %v316_v24 = vrot.slane %v308_v11, 7 }
 0x176   :  { %v335_v20 = vsel %vm41_vm0, %v328_v16, 0.0  ;;  %337 = vrot.lane.b32.xlu0 %v307_v18, %s675_s22  ;;  %v327_v45 = vrot.slane %v307_v18, 1  ;;  %v302_v58 = vmul.f32 %v298_v19, %v218_v21  ;;  %v315_v23 = vrot.slane %v307_v18, 7 }
 0x177   :  { %v297_v26 = vsub.f32 1.0, %v293_v22 }
 0x178   :  { %353 = vrot.lane.b32.xlu1 %v335_v20, %s676_s6  ;;  %v329_v27 = vsel %vm41_vm0, %v327_v45, %v328_v16  ;;  %v306_v28 = vadd.f32 1.0, %v302_v58  ;;  %v317_v29 = vsel %vm28_vm2, %v315_v23, %v316_v24  ;;  %v325_v46 = vsel %vm28_vm2, 0.0, %v315_v23 }
 0x179   :  { %v301_v30 = vmul.f32 %v297_v26, %v217_v61 }
 0x17a   :  { %351 = vrot.lane.b32.xlu0 %v329_v27, %s676_s6  ;;  %v310_v31 = vmul.f32 %v306_v28, %v206_v25 }
 0x17b   :  { %v305_v33 = vadd.f32 1.0, %v301_v30 }
 0x17c   :  { %343 = vrot.lane.b32.xlu1 %v310_v31, %s675_s22  ;;  %v331_v55 = vrot.slane %v310_v31, 1  ;;  %v319_v38 = vrot.slane %v310_v31, 7 }
 0x17d   :  { %v309_v34 = vmul.f32 %v305_v33, %v205_v32 }
 0x17e   :  { %v336_v35 = vsel %vm41_vm0, %v331_v55, 0.0 }
 0x17f   :  { %341 = vrot.lane.b32.xlu0 %v309_v34, %s675_s22  ;;  %v330_v36 = vrot.slane %v309_v34, 1  ;;  %v318_v37 = vrot.slane %v309_v34, 7 }
 0x180   :  { %357 = vrot.lane.b32.xlu1 %v336_v35, %s676_s6 }
 0x181   :  { %v332_v39 = vsel %vm41_vm0, %v330_v36, %v331_v55  ;;  %v320_v40 = vsel %vm28_vm2, %v318_v37, %v319_v38  ;;  %v326_v56 = vsel %vm28_vm2, 0.0, %v318_v37 }
 0x183   :  { %355 = vrot.lane.b32.xlu0 %v332_v39, %s676_s6 }
 0x1e6   :  { %v340_v59 = vpop.permute.xlu1 %339 }
 0x1e7   :  { %v364_v50 = vsel %vm78_vm3, %v317_v29, %v340_v59 }
 0x1e8   :  { %v338_v41 = vpop.permute.xlu0 %337 }
 0x1e9   :  { %v363_v48 = vsel %vm78_vm3, %v325_v46, %v338_v41 }
 0x1ea   :  { %v354_v43 = vpop.permute.xlu1 %353 }
 0x1eb   :  { %v368_v52 = vsel %vm83_vm4, %v364_v50, %v354_v43 }
 0x1ec   :  { %v352_v49 = vpop.permute.xlu0 %351 }
 0x1ed   :  { %v367_v51 = vsel %vm83_vm4, %v363_v48, %v352_v49 }
 0x1ee   :  { %v344_v53 = vpop.permute.xlu1 %343  ;;  %634 = vmatprep.mubr.msk.f32.mxu1 %vm97_vm5, %v367_v51 }
 0x1ef   :  { %635 = vmatmul.mubr.msk.f32.vlgmr.msra.gmra.mxu1 %vm97_vm5, %v368_v52  ;;  %v366_v0 = vsel %vm78_vm3, %v320_v40, %v344_v53 }
 0x1f1   :  { %v342_v54 = vpop.permute.xlu0 %341 }
 0x1f2   :  { %v358_v57 = vpop.permute.xlu1 %357  ;;  %v365_v62 = vsel %vm78_vm3, %v326_v56, %v342_v54 }
 0x1f3   :  { %v370_v1 = vsel %vm83_vm4, %v366_v0, %v358_v57 }
 0x1f5   :  { %v356_v63 = vpop.permute.xlu0 %355 }
 0x1f6   :  { %v369_v44 = vsel %vm83_vm4, %v365_v62, %v356_v63 }
 0x1f7   :  { %637 = vmatprep.mubr.msk.f32.mxu1 %vm97_vm5, %v369_v44 }
 0x1f8   :  { %638 = vmatmul.mubr.msk.f32.gmra.mxu1 %vm97_vm5, %v370_v1 }
 0x2af   :  { %v636_v3 = vpop.f32.mrf.mxu1 }
 0x2b0   :  { %v858_v4 = vadd.f32 %v636_v3, %v602_v2 }
 0x2b1   :  { %v461_v47 = vpop.f32.mrf.mxu1 }
 0x2b2   :  { %v861_v5 = vmul.f32 0.70710677, %v858_v4  ;;  %v863_v6 = vadd.f32 %v602_v2, %v461_v47 }
 0x2b4   :  { %v497_v7 = vand.u32 2147483647, %v861_v5  ;;  %v867_v8 = vmul.f32 0.70710677, %v863_v6  ;;  %vm489_vm10 = vcmp.ge.f32.partialorder %v861_v5, 0.0 }
 0x2b6   :  { %v501_v9 = vmul.f32 0.3275911, %v497_v7  ;;  %v496_v10 = vand.u32 2147483647, %v867_v8  ;;  %v553_v21 = vsub.f32 0.0, %v497_v7  ;;  %vm488_vm11 = vcmp.ge.f32.partialorder %v867_v8, 0.0 }
 0x2b8   :  { %v505_v11 = vadd.f32 1.0, %v501_v9  ;;  %v500_v12 = vmul.f32 0.3275911, %v496_v10  ;;  %v639_v13 = vpop.f32.mrf.mxu1  ;;  %v552_v23 = vsub.f32 0.0, %v496_v10  ;;  %v557_v24 = vmul.f32 %v553_v21, %v497_v7 }
 0x2b9   :  { %v870_v14 = vadd.f32 %v639_v13, %v602_v2 }
 0x2ba   :  { %659 = vrcp.f32 %v505_v11  ;;  %v504_v15 = vadd.f32 1.0, %v500_v12  ;;  %v471_v16 = vpop.f32.mrf.mxu1  ;;  %v556_v27 = vmul.f32 %v552_v23, %v496_v10  ;;  %v562_v61 = vmul.f32 1.442695, %v557_v24 }
 0x2bb   :  { %v873_v42 = vmul.f32 0.70710677, %v870_v14  ;;  %v875_v17 = vadd.f32 %v602_v2, %v471_v16  ;;  %v481_v24 = vmul.f32 0.5, %v858_v4 }
 0x2bc   :  { %661 = vrcp.f32 %v504_v15  ;;  %v560_v33 = vmul.f32 1.442695, %v556_v27 }
 0x2bd   :  { %v499_v18 = vand.u32 2147483647, %v873_v42  ;;  %v879_v19 = vmul.f32 0.70710677, %v875_v17  ;;  %vm491_vm12 = vcmp.ge.f32.partialorder %v873_v42, 0.0 }
 0x2bf   :  { %v503_v20 = vmul.f32 0.3275911, %v499_v18  ;;  %v498_v22 = vand.u32 2147483647, %v879_v19  ;;  %v555_v29 = vsub.f32 0.0, %v499_v18  ;;  %vm490_vm13 = vcmp.ge.f32.partialorder %v879_v19, 0.0 }
 0x2c1   :  { %v507_v45 = vadd.f32 1.0, %v503_v20  ;;  %v502_v58 = vmul.f32 0.3275911, %v498_v22  ;;  %v554_v34 = vsub.f32 0.0, %v498_v22  ;;  %v559_v36 = vmul.f32 %v555_v29, %v499_v18 }
 0x2c2   :  { %v493_v18 = vsel %vm489_vm10, 1.0, %v677_v60 }
 0x2c3   :  { %663 = vrcp.f32 %v507_v45  ;;  %v506_v25 = vadd.f32 1.0, %v502_v58  ;;  %v558_v59 = vmul.f32 %v554_v34, %v498_v22  ;;  %v566_v46 = vmul.f32 1.442695, %v559_v36 }
 0x2c5   :  { %665 = vrcp.f32 %v506_v25  ;;  %v564_v54 = vmul.f32 1.442695, %v558_v59  ;;  %v492_v25 = vsel %vm488_vm11, 1.0, %v677_v60 }
 0x2c6   :  { %667 = vpow2.f32 %v562_v61 }
 0x2c7   :  { %v660_v26 = vpop.eup %659  ;;  %669 = vpow2.f32 %v560_v33 }
 0x2c8   :  { %v517_v28 = vmul.f32 1.0614054, %v660_v26  ;;  %671 = vpow2.f32 %v566_v46 }
 0x2c9   :  { %v662_v30 = vpop.eup %661  ;;  %673 = vpow2.f32 %v564_v54 }
 0x2ca   :  { %v521_v31 = vadd.f32 -1.4531521, %v517_v28  ;;  %v516_v32 = vmul.f32 1.0614054, %v662_v30 }
 0x2cc   :  { %v525_v55 = vmul.f32 %v660_v26, %v521_v31  ;;  %v520_v35 = vadd.f32 -1.4531521, %v516_v32  ;;  %v480_v31 = vmul.f32 0.5, %v863_v6 }
 0x2ce   :  { %v529_v37 = vadd.f32 1.4214138, %v525_v55  ;;  %v524_v38 = vmul.f32 %v662_v30, %v520_v35  ;;  %v495_v35 = vsel %vm491_vm12, 1.0, %v677_v60 }
 0x2d0   :  { %v664_v39 = vpop.eup %663  ;;  %v533_v40 = vmul.f32 %v660_v26, %v529_v37  ;;  %v528_v41 = vadd.f32 1.4214138, %v524_v38  ;;  %v483_v37 = vmul.f32 0.5, %v870_v14 }
 0x2d1   :  { %v519_v43 = vmul.f32 1.0614054, %v664_v39 }
 0x2d2   :  { %v537_v48 = vadd.f32 -0.28449672, %v533_v40  ;;  %v666_v49 = vpop.eup %665  ;;  %v532_v50 = vmul.f32 %v662_v30, %v528_v41  ;;  %v482_v41 = vmul.f32 0.5, %v875_v17 }
 0x2d3   :  { %v523_v51 = vadd.f32 -1.4531521, %v519_v43  ;;  %v518_v53 = vmul.f32 1.0614054, %v666_v49  ;;  %v668_v3 = vpop.eup %667 }
 0x2d4   :  { %v541_v52 = vmul.f32 %v660_v26, %v537_v48  ;;  %v536_v56 = vadd.f32 -0.28449672, %v532_v50  ;;  %v670_v13 = vpop.eup %669 }
 0x2d5   :  { %v527_v57 = vmul.f32 %v664_v39, %v523_v51  ;;  %v522_v63 = vadd.f32 -1.4531521, %v518_v53  ;;  %v672_v61 = vpop.eup %671 }
 0x2d6   :  { %v545_v62 = vadd.f32 0.2548296, %v541_v52  ;;  %v540_v0 = vmul.f32 %v662_v30, %v536_v56  ;;  %v674_v33 = vpop.eup %673 }
 0x2d7   :  { %v531_v44 = vadd.f32 1.4214138, %v527_v57  ;;  %v526_v2 = vmul.f32 %v666_v49, %v522_v63 }
 0x2d8   :  { %v549_v1 = vmul.f32 %v660_v26, %v545_v62  ;;  %v544_v47 = vadd.f32 0.2548296, %v540_v0 }
 0x2d9   :  { %v535_v7 = vmul.f32 %v664_v39, %v531_v44  ;;  %v530_v10 = vadd.f32 1.4214138, %v526_v2 }
 0x2da   :  { %v569_v9 = vmul.f32 %v668_v3, %v549_v1  ;;  %v548_v11 = vmul.f32 %v662_v30, %v544_v47 }
 0x2db   :  { %v539_v12 = vadd.f32 -0.28449672, %v535_v7  ;;  %v534_v16 = vmul.f32 %v666_v49, %v530_v10 }
 0x2dc   :  { %v573_v15 = vsub.f32 1.0, %v569_v9  ;;  %v568_v20 = vmul.f32 %v670_v13, %v548_v11 }
 0x2dd   :  { %v543_v21 = vmul.f32 %v664_v39, %v539_v12  ;;  %v538_v45 = vadd.f32 -0.28449672, %v534_v16 }
 0x2de   :  { %v577_v22 = vmul.f32 %v573_v15, %v493_v18  ;;  %v572_v58 = vsub.f32 1.0, %v568_v20 }
 0x2df   :  { %v547_v23 = vadd.f32 0.2548296, %v543_v21  ;;  %v542_v26 = vmul.f32 %v666_v49, %v538_v45 }
 0x2e0   :  { %v581_v5 = vadd.f32 1.0, %v577_v22  ;;  %v576_v27 = vmul.f32 %v572_v58, %v492_v25 }
 0x2e1   :  { %v551_v28 = vmul.f32 %v664_v39, %v547_v23  ;;  %v546_v30 = vadd.f32 0.2548296, %v542_v26  ;;  %v494_v39 = vsel %vm490_vm13, 1.0, %v677_v60 }
 0x2e2   :  { %v585_v29 = vmul.f32 %v581_v5, %v481_v24  ;;  %v580_v8 = vadd.f32 1.0, %v576_v27 }
 0x2e3   :  { %v571_v32 = vmul.f32 %v672_v61, %v551_v28  ;;  %v550_v4 = vmul.f32 %v666_v49, %v546_v30 }
 0x2e4   :  { %589 = vst.msk [vmem:[%s915_s5 + $0x8] sm:$0xff] %vm83_vm4, %v585_v29  ;;  %v584_v55 = vmul.f32 %v580_v8, %v480_v31 }
 0x2e5   :  { %v575_v34 = vsub.f32 1.0, %v571_v32  ;;  %v570_v36 = vmul.f32 %v674_v33, %v550_v4 }
 0x2e6   :  { %588 = vst.msk [vmem:[%s915_s5] sm:$0xff] %vm83_vm4, %v584_v55 }
 0x2e7   :  { %v579_v6 = vmul.f32 %v575_v34, %v495_v35  ;;  %v574_v42 = vsub.f32 1.0, %v570_v36 }
 0x2e9   :  { %v583_v38 = vadd.f32 1.0, %v579_v6  ;;  %v578_v40 = vmul.f32 %v574_v42, %v494_v39 }
 0x2eb   :  { %v587_v59 = vmul.f32 %v583_v38, %v483_v37  ;;  %v582_v43 = vadd.f32 1.0, %v578_v40 }
 0x2ed   :  { %591 = vst.msk [vmem:[%s915_s5 + $0x18] sm:$0xff] %vm83_vm4, %v587_v59  ;;  %v586_v19 = vmul.f32 %v582_v43, %v482_v41 }
 0x2ef   :  { %590 = vst.msk [vmem:[%s915_s5 + $0x10] sm:$0xff] %vm83_vm4, %v586_v19 }

</bundles_post_ra>
